<compile_context>
chip_gen: v7x
topology: tpu7x:2x2x1
jax: 0.10.0
libtpu: 0.0.40
codegen_flags: <defaults>
</compile_context>

<pallas_src>
import jax
import jax.numpy as jnp
from jax import lax
from jax.experimental import pallas as pl
from jax.experimental.pallas import tpu as pltpu


def _attn_kernel(p_ref, q_ref, w_ref, o_ref):
    # p_ref: (B, Lp, D_in)   q_ref: (B, Lq, D_in)
    # w_ref: (D_attn, D_in)  -- native PyTorch nn.Linear layout, NOT transposed
    # o_ref: (B, Lp, Lq)
    B, Lp, D_in = p_ref.shape
    _, Lq, _ = q_ref.shape
    n_p = B * Lp  # static

    # Assemble the fused-projection slab from the two unpadded inputs in VMEM:
    # one MXU weight push covers both the p and q projections.
    x = jnp.concatenate(
        [p_ref[...].reshape(n_p, D_in), q_ref[...].reshape(B * Lq, D_in)],
        axis=0)                                            # (B*(Lp+Lq), D_in)

    # x @ W^T without transposing W: contract the last dim of both operands.
    xw = lax.dot_general(
        x, w_ref[...],
        dimension_numbers=(((1,), (1,)), ((), ())),
        preferred_element_type=jnp.float32)                # (B*(Lp+Lq), D_attn)
    xw = jnp.maximum(xw, 0.0)                              # relu on real rows only

    d_attn = xw.shape[1]
    p_out = xw[:n_p, :].reshape(B, Lp, d_attn)             # (B, Lp, D_attn)
    q_out = xw[n_p:, :].reshape(B, Lq, d_attn)             # (B, Lq, D_attn)

    # Batched score: contract D_attn on BOTH operands (batched over B) —
    # avoids materializing q_out.transpose (no XLU vxpose before the MXU).
    score = lax.dot_general(
        p_out, q_out,
        dimension_numbers=(((2,), (2,)), ((0,), (0,))),
        preferred_element_type=jnp.float32)                # (B, Lp, Lq)

    o_ref[...] = score.astype(o_ref.dtype)


def attn_forward(p, q, w_lin):
    """p: (B, Lp, D_in), q: (B, Lq, D_in), w_lin: (D_attn, D_in) (PyTorch layout)."""
    B, Lp, D_in = p.shape
    Bq, Lq, _ = q.shape
    assert Bq == B
    D_attn = w_lin.shape[0]

    # Advisory cost for the XLA scheduler (latency-bound regime).
    flops = (2 * B * (Lp + Lq) * D_in * D_attn          # fused projection
             + 2 * B * Lp * Lq * D_attn)                # score bmm
    itemsize = jnp.dtype(p.dtype).itemsize
    bytes_accessed = itemsize * (p.size + q.size + w_lin.size + B * Lp * Lq)

    return pl.pallas_call(
        _attn_kernel,
        out_shape=jax.ShapeDtypeStruct((B, Lp, Lq), p.dtype),
        in_specs=[
            pl.BlockSpec(memory_space=pltpu.MemorySpace.VMEM),
            pl.BlockSpec(memory_space=pltpu.MemorySpace.VMEM),
            pl.BlockSpec(memory_space=pltpu.MemorySpace.VMEM),
        ],
        out_specs=pl.BlockSpec(memory_space=pltpu.MemorySpace.VMEM),
        cost_estimate=pl.CostEstimate(
            flops=flops, transcendentals=0, bytes_accessed=bytes_accessed),
    )(p, q, w_lin)


def attn_reference(p, q, w_lin):
    p_out = jnp.maximum(jnp.einsum("bld,ad->bla", p, w_lin), 0.0)
    q_out = jnp.maximum(jnp.einsum("bld,ad->bla", q, w_lin), 0.0)
    return jnp.einsum("bpa,bqa->bpq", p_out, q_out)


if __name__ == "__main__":
    # Small shapes consistent with the module's forward:
    #   input_size = 32, attn_size = 16, batch = 2, Lp = Lq = 8
    B, Lp, Lq, D_in, D_attn = 2, 8, 8, 32, 16

    key = jax.random.PRNGKey(0)
    kp, kq, kw = jax.random.split(key, 3)

    p = jax.random.normal(kp, (B, Lp, D_in), dtype=jnp.float32)
    q = jax.random.normal(kq, (B, Lq, D_in), dtype=jnp.float32)
    # Deterministic W_lin init (nn.Linear weight shape: (attn_size, input_size),
    # bias=False per the module spec).
    bound = 1.0 / jnp.sqrt(D_in)
    w_lin = jax.random.uniform(kw, (D_attn, D_in), dtype=jnp.float32,
                               minval=-bound, maxval=bound)

    score = attn_forward(p, q, w_lin)
    jax.block_until_ready(score)

    ref = attn_reference(p, q, w_lin)
    assert score.shape == (B, Lp, Lq)
    assert jnp.allclose(score, ref, atol=1e-5, rtol=1e-5), "mismatch vs reference"

    print("KERNEL_OK")
</pallas_src>

<mosaic_0001>
module attributes {stable_mosaic.version = 11 : i64} {
  func.func @_attn_kernel(%arg0: memref<2x8x32xf32, #tpu.memory_space<vmem>>, %arg1: memref<2x8x32xf32, #tpu.memory_space<vmem>>, %arg2: memref<16x32xf32, #tpu.memory_space<vmem>>, %arg3: memref<2x8x8xf32, #tpu.memory_space<vmem>>) attributes {dimension_semantics = [], scalar_prefetch = 0 : i64, scratch_operands = 0 : i64, tpu.core_type = #tpu.core_type<tc>} {
    %c0 = arith.constant 0 : index
    %c0_0 = arith.constant 0 : index
    %c0_1 = arith.constant 0 : index
    %0 = vector.load %arg0[%c0, %c0_0, %c0_1] : memref<2x8x32xf32, #tpu.memory_space<vmem>>, vector<2x8x32xf32>
    %1 = vector.shape_cast %0 : vector<2x8x32xf32> to vector<16x32xf32>
    %c0_2 = arith.constant 0 : index
    %c0_3 = arith.constant 0 : index
    %c0_4 = arith.constant 0 : index
    %2 = vector.load %arg1[%c0_2, %c0_3, %c0_4] : memref<2x8x32xf32, #tpu.memory_space<vmem>>, vector<2x8x32xf32>
    %3 = vector.shape_cast %2 : vector<2x8x32xf32> to vector<16x32xf32>
    %4 = tpu.concatenate %1, %3 in 0 : vector<16x32xf32>, vector<16x32xf32> -> vector<32x32xf32>
    %c0_5 = arith.constant 0 : index
    %c0_6 = arith.constant 0 : index
    %5 = vector.load %arg2[%c0_5, %c0_6] : memref<16x32xf32, #tpu.memory_space<vmem>>, vector<16x32xf32>
    %cst = arith.constant dense<0.000000e+00> : vector<32x16xf32>
    %6 = tpu.matmul %4, %5, %cst {dimension_numbers = #tpu.dot_dimension_numbers<[1], [1], [0], [0], [0, 0, 1, 0], [], []>} : vector<32x32xf32>, vector<16x32xf32>, vector<32x16xf32> -> vector<32x16xf32>
    %cst_7 = arith.constant 0.000000e+00 : f32
    %7 = vector.broadcast %cst_7 : f32 to vector<32x16xf32>
    %8 = arith.maximumf %6, %7 : vector<32x16xf32>
    %9 = vector.extract_strided_slice %8 {offsets = [0, 0], sizes = [16, 16], strides = [1, 1]} : vector<32x16xf32> to vector<16x16xf32>
    %10 = vector.shape_cast %9 : vector<16x16xf32> to vector<2x8x16xf32>
    %11 = vector.extract_strided_slice %8 {offsets = [16, 0], sizes = [16, 16], strides = [1, 1]} : vector<32x16xf32> to vector<16x16xf32>
    %12 = vector.shape_cast %11 : vector<16x16xf32> to vector<2x8x16xf32>
    %cst_8 = arith.constant dense<0.000000e+00> : vector<2x8x8xf32>
    %13 = tpu.matmul %10, %12, %cst_8 {dimension_numbers = #tpu.dot_dimension_numbers<[2], [2], [1], [1], [0, 0, 0, 1, 1, 1], [0], [0]>} : vector<2x8x16xf32>, vector<2x8x16xf32>, vector<2x8x8xf32> -> vector<2x8x8xf32>
    %c0_9 = arith.constant 0 : index
    %c0_10 = arith.constant 0 : index
    %c0_11 = arith.constant 0 : index
    %14 = vector.load %arg3[%c0_9, %c0_10, %c0_11] : memref<2x8x8xf32, #tpu.memory_space<vmem>>, vector<2x8x8xf32>
    tpu.vector_store %arg3[%c0_9, %c0_10, %c0_11], %13 {strides = array<i32>} : memref<2x8x8xf32, #tpu.memory_space<vmem>>, vector<2x8x8xf32>,
    return
  }
}

</mosaic_0001>

<bundles_post_ra>
// kernel: tpu_custom_call.1
= control target key start
LH: loop header
LB: loop body
LE: loop exit
PB: predicated region body
PF: predicated region fallthrough
CT: control target
= control target key end

     0   :  { %8 = vsyncpa [#allocation3], 0  ;;  %s587_s0 = inlined_call_operand.hbm [shape: f32[2,8,32], index: 0, kind: input, shape index: {}]   ;;  %s588_s1 = inlined_call_operand.hbm [shape: f32[2,8,32], index: 1, kind: input, shape index: {}]   ;;  %s589_s2 = inlined_call_operand.hbm [shape: f32[16,32], index: 2, kind: input, shape index: {}]   ;;  %s590_s3 = inlined_call_operand.hbm [shape: f32[2,8,8], index: 3, kind: output, shape index: {}]  }
   0x1   :  { %9 = vsyncpa [#allocation6], 0 }
   0x2   :  { %10 = vsyncpa [#allocation4], 0  ;;  %s492_s12 = smov [#allocation5]   ;;  %s493_s14 = smov [#allocation2]  }
   0x3   :  { %s28_s13 = sshll.u32 %s492_s12, 4  ;;  %s16_s15 = sshll.u32 %s493_s14, 4  ;;  %s29_s13 = int_to_ptr.vmem [resolvable:$true] %s28_s13  ;;  %s520_s15 = int_to_ptr.vmem [resolvable:$true] %s16_s15 }
   0x4   :  { %s398_s18 = scalar_lea.hbm %s588_s1, 256 }
   0x5   :  { %p399_p0 = scmp.ne.s32.totalorder %s588_s1, %s398_s18  ;;  %p402_p1 = scmp.lt.u32.totalorder %s398_s18, %s588_s1 }
   0x7   :  { %p404_p2 = pnand %p402_p1, %p399_p0 }
   0x9   :  { %407 = shalt.err (!%p404_p2)
}
   0xa   :  { %s408_s23 = scalar_lea.vmem %s29_s13, 256  ;;  %p413_p4 = scmp.lt.s32.totalorder %s29_s13, %s29_s13 }
   0xb   :  { %p409_p3 = scmp.ne.s32.totalorder %s29_s13, %s408_s23  ;;  %p414_p5 = scmp.lt.s32.totalorder %s408_s23, %s408_s23 }
   0xd   :  { %p415_p6 = por %p414_p5, %p413_p4 }
   0xf   :  { %p416_p7 = pnand %p415_p6, %p409_p3 }
  0x11   :  { %419 = shalt.err (!%p416_p7)
}
  0x12   :  { %s494_s24 = smov 128   ;;  %s495_s25 = smov 8  }
  0x13   :  { %34 = dma.hbm_to_vmem [thread:$0]  %s588_s1, 256, %s29_s13, [#allocation6], %s494_s24, %s494_s24, %s495_s25  }
  0x14   :  { %s420_s30 = scalar_lea.hbm %s587_s0, 256 }
  0x15   :  { %p421_p8 = scmp.ne.s32.totalorder %s587_s0, %s420_s30  ;;  %p424_p9 = scmp.lt.u32.totalorder %s420_s30, %s587_s0 }
  0x17   :  { %p426_p10 = pnand %p424_p9, %p421_p8 }
  0x19   :  { %429 = shalt.err (!%p426_p10)
}
  0x1a   :  { %s430_s8 = scalar_lea.vmem %s520_s15, 256  ;;  %p435_p12 = scmp.lt.s32.totalorder %s520_s15, %s520_s15 }
  0x1b   :  { %p431_p11 = scmp.ne.s32.totalorder %s520_s15, %s430_s8  ;;  %p436_p13 = scmp.lt.s32.totalorder %s430_s8, %s430_s8 }
  0x1d   :  { %p437_p0 = por %p436_p13, %p435_p12 }
  0x1f   :  { %p438_p1 = pnand %p437_p0, %p431_p11 }
  0x21   :  { %441 = shalt.err (!%p438_p1)
}
  0x22   :  { %22 = dma.hbm_to_vmem [thread:$0]  %s587_s0, 256, %s520_s15, [#allocation3], %s494_s24, %s494_s24, %s495_s25  }
  0x23   :  { %s496_s10 = smov [#allocation7]   ;;  %s442_s14 = scalar_lea.hbm %s589_s2, 256 }
  0x24   :  { %s40_s11 = sshll.u32 %s496_s10, 4  ;;  %p443_p2 = scmp.ne.s32.totalorder %s589_s2, %s442_s14  ;;  %s41_s11 = int_to_ptr.vmem [resolvable:$true] %s40_s11 }
  0x25   :  { %p446_p3 = scmp.lt.u32.totalorder %s442_s14, %s589_s2 }
  0x27   :  { %p448_p4 = pnand %p446_p3, %p443_p2 }
  0x29   :  { %451 = shalt.err (!%p448_p4)
}
  0x2a   :  { %s452_s20 = scalar_lea.vmem %s41_s11, 256  ;;  %p457_p6 = scmp.lt.s32.totalorder %s41_s11, %s41_s11 }
  0x2b   :  { %p453_p5 = scmp.ne.s32.totalorder %s41_s11, %s452_s20  ;;  %p458_p7 = scmp.lt.s32.totalorder %s452_s20, %s452_s20 }
  0x2d   :  { %p459_p8 = por %p458_p7, %p457_p6 }
  0x2f   :  { %p460_p9 = pnand %p459_p8, %p453_p5 }
  0x31   :  { %463 = shalt.err (!%p460_p9)
}
  0x32   :  { %46 = dma.hbm_to_vmem [thread:$0]  %s589_s2, 256, %s41_s11, [#allocation6], %s494_s24, %s494_s24, %s495_s25  }
  0x33   :  { %486 = dma.done.wait [#allocation3], 256  }
  0x34   :  { %487 = vsyncadd [#allocation3], 4294967040 }
  0x35   :  { %488 = dma.done.wait [#allocation6], 512  }
  0x36   :  { %489 = vsyncadd [#allocation6], 4294966784  ;;  %vm62_vm0 = vcmask 261120   ;;  %v60_v0 = vld [vmem:[#allocation7] sm:$0xff]  ;;  %v61_v1 = vld [vmem:[#allocation7 + $0x8] sm:$0xff]  ;;  %v497_v7 = vmov 0.0  }
  0x37   :  { %vm385_vm1 = vmpackc.low %vm62_vm0, %vm62_vm0  ;;  %v56_v2 = vld [vmem:[#allocation2] sm:$0xff]  ;;  %v384_v3 = vpack.c.bf16 %v61_v1, %v60_v0  ;;  %v57_v4 = vld [vmem:[#allocation2 + $0x8] sm:$0xff]  ;;  %374 = vmatprep.subr.mxu1 %v497_v7  ;;  %vm498_vm2 = vmmov 0   ;;  %vm170_vm3 = vcmask 130048   ;;  %vm323_vm4 = vcmask 64512   ;;  %s499_s2 = smov [#allocation8]  }
  0x38   :  { %368 = vmatprep.mubr.msk.f32.mxu0 %vm62_vm0, %v56_v2  ;;  %v58_v5 = vld [vmem:[#allocation5] sm:$0xff]  ;;  %v59_v6 = vld [vmem:[#allocation5 + $0x8] sm:$0xff]  ;;  %376 = vmatprep.mubr.msk.f32.mxu1 %vm498_vm2, %v497_v7  ;;  %s331_s21 = sshll.u32 %s499_s2, 4  ;;  %s332_s21 = int_to_ptr.vmem [resolvable:$true] %s331_s21 }
  0x39   :  { %386 = vmatprep.subr.msk.bf16.mxu0 %vm385_vm1, %v384_v3  ;;  %s464_s22 = scalar_lea.vmem %s332_s21, 256  ;;  %p469_p11 = scmp.lt.s32.totalorder %s332_s21, %s332_s21 }
  0x3a   :  { %389 = vmatpush3.bf16.xpose.msk.msra.mxu0 %vm385_vm1, %v384_v3  ;;  %p465_p10 = scmp.ne.s32.totalorder %s332_s21, %s464_s22  ;;  %p470_p12 = scmp.lt.s32.totalorder %s464_s22, %s464_s22 }
  0x3c   :  { %p471_p13 = por %p470_p12, %p469_p11 }
  0x3e   :  { %p472_p0 = pnand %p471_p13, %p465_p10 }
  0x41   :  { %369 = vmatmul.mubr.msk.f32.vlgmr.msra.gmra.mrb[0].mxu0 %vm62_vm0, %v57_v4 }
  0x42   :  { %371 = vmatprep.mubr.msk.f32.mxu0 %vm62_vm0, %v58_v5 }
  0x45   :  { %372 = vmatmul.mubr.msk.f32.gmra.mrb[2].mxu0 %vm62_vm0, %v59_v6 }
 0x114   :  { %v370_v8 = vpop.f32.mrb[0].mxu0 }
 0x115   :  { %v147_v9 = vpop.f32.mrb[1].mxu0  ;;  %v167_v15 = vmax.f32 %v370_v8, 0.0 }
 0x116   :  { %v166_v13 = vmax.f32 %v147_v9, 0.0 }
 0x118   :  { %v373_v10 = vpop.f32.mrb[2].mxu0 }
 0x119   :  { %v157_v11 = vpop.f32.mrb[3].mxu0  ;;  %v169_v14 = vmax.f32 %v373_v10, 0.0 }
 0x11a   :  { %v168_v12 = vmax.f32 %v157_v11, 0.0 }
 0x11c   :  { %375 = vmatpush3.xpose.msk.msra.mxu1 %vm170_vm3, %v168_v12 }
 0x11d   :  { %379 = vmatprep.subr.mxu1 %v497_v7 }
 0x11f   :  { %377 = vmatmul.mubr.msk.f32.vlgmr.msra.gmra.mrb[0].mxu1 %vm170_vm3, %v166_v13 }
 0x120   :  { %380 = vmatpush3.xpose.msk.msra.mxu1 %vm170_vm3, %v169_v14  ;;  %381 = vmatprep.mubr.msk.f32.mxu1 %vm498_vm2, %v497_v7 }
 0x123   :  { %382 = vmatmul.mubr.msk.f32.vlgmr.msra.gmra.mrb[2].mxu1 %vm170_vm3, %v167_v15 }
 0x1f2   :  { %v243_v16 = vpop.f32.mrb[0].mxu1 }
 0x1f3   :  { %324 = vst.msk [vmem:[#allocation8] sm:$0xff] %vm323_vm4, %v243_v16  ;;  %v378_v17 = vpop.f32.mrb[1].mxu1 }
 0x1f6   :  { %v319_v18 = vpop.f32.mrb[2].mxu1 }
 0x1f7   :  { %325 = vst.msk [vmem:[#allocation8 + $0x8] sm:$0xff] %vm323_vm4, %v319_v18  ;;  %v383_v19 = vpop.f32.mrb[3].mxu1 }
 0x1f8   :  { %475 = shalt.err (!%p472_p0)
}
 0x1f9   :  { %s476_s27 = scalar_lea.hbm %s590_s3, 256 }
 0x1fa   :  { %p477_p1 = scmp.ne.s32.totalorder %s590_s3, %s476_s27  ;;  %p480_p2 = scmp.lt.u32.totalorder %s476_s27, %s590_s3 }
 0x1fc   :  { %p482_p3 = pnand %p480_p2, %p477_p1 }
 0x1fe   :  { %485 = shalt.err (!%p482_p3)
}
 0x1ff   :  { %337 = dma.vmem_to_hbm [thread:$0]  %s332_s21, 256, %s590_s3, [#allocation4], %s494_s24, %s494_s24, %s495_s25  }
 0x200   :  { %490 = dma.done.wait [#allocation4], 256  }
 0x201   :  { %491 = vsyncadd [#allocation4], 4294967040 }
 0x202   :  { %341 = vsyncpa [#allocation3], 1 }
 0x203   :  { %342 = vsyncpa [#allocation6], 1 }
 0x204   :  { %343 = vsyncpa [#allocation4], 1 }

</bundles_post_ra>
